<compile_context>
chip_gen: v6e
topology: v6e:2x2x1
jax: 0.10.0
libtpu: 0.0.40
codegen_flags: <defaults>
</compile_context>

<pallas_src>
import functools

import jax
import jax.numpy as jnp
from jax.experimental import pallas as pl
from jax.experimental.pallas import tpu as pltpu


def netd_kernel(x_ref, w0_ref, b0_ref, w1row_ref, b1_ref, o_ref):
    # fc0 on the MXU: (TB, 784) @ (784, 10), f32 accumulation.
    h = jnp.dot(x_ref[...], w0_ref[...], preferred_element_type=jnp.float32)
    # bias + ReLU on the VPU.
    h = jnp.maximum(h + b0_ref[...], 0.0)                        # (TB, 10) f32
    # fc1 as a tiny trans-B matmul producing a lane-dense (1, TB) row directly
    # (avoids a sublane-major (TB, 1) result -> no masked stores, no 128-lane
    # padded output buffer).
    y = jax.lax.dot_general(
        w1row_ref[...], h,
        dimension_numbers=(((1,), (1,)), ((), ())),
        preferred_element_type=jnp.float32)                      # (1, TB)
    y = y + b1_ref[...]                                          # (1, 1) broadcast
    # Exact sigmoid: exp on the EUP + divide.  HBM-bound kernel -> this is free
    # and bit-matches jax.nn.sigmoid far better than an approx reciprocal.
    o_ref[...] = 1.0 / (1.0 + jnp.exp(-y))


@functools.partial(jax.jit, static_argnames=("block_b",))
def netd_forward(x, w0, b0, w1, b1, *, block_b=2048):
    """x: (B, 1, 28, 28) (f32 or bf16) -> (B, 1) float32.

    Weights are stored as (in_features, out_features): the kernel computes
    x @ W + b  (== PyTorch's x @ W_torch.T + b).
    """
    x_flat = x.reshape(-1, 28 * 28)          # same as torch x.view(-1, 784)
    B = x_flat.shape[0]

    # Do NOT cast x here: an astype in the wrapper is a separate XLA op that
    # re-reads/re-writes the whole dominant HBM stream.  If the caller already
    # stores x in bf16 we consume it directly; only resident w0 (31 KiB) is
    # cast to match.
    w0 = w0.astype(x_flat.dtype)

    assert block_b % 8 == 0, "block_b must be a multiple of the sublane count"
    # Single full-array tile for small batches (block == full dims is always a
    # legal BlockSpec); otherwise stream block_b-row tiles with a cdiv grid and
    # let Pallas mask the partial boundary block (no jnp.pad copy of x).
    tb = B if B <= block_b else block_b
    num_tiles = pl.cdiv(B, tb)

    # Scoped VMEM: 2x double-buffered x tiles + resident params + lane-dense
    # output buffers + slack; clamp to [32, 48] MiB (v5e scoped default is only
    # 16 MiB so the explicit raise is required; 48 MiB keeps headroom under
    # v7x's 64 MiB physical VMEM).
    itemsize = jnp.dtype(x_flat.dtype).itemsize
    est = (2 * tb * 784 * itemsize          # x tiles (double-buffered)
           + 2 * 784 * 128 * 4              # resident w0 (lane-padded, 2 bufs)
           + 2 * 8 * tb * 4                 # (1, tb) output blocks
           + (4 << 20))                     # compiler-internal slack
    vmem_limit = int(min(max(est, 32 << 20), 48 << 20))

    b0_row = b0.reshape(1, 10)
    w1_row = w1.reshape(1, 10)               # (10, 1) column -> (1, 10) row
    b1_2d = b1.reshape(1, 1)

    out_rows = pl.pallas_call(
        netd_kernel,
        out_shape=jax.ShapeDtypeStruct((num_tiles, tb), jnp.float32),
        grid=(num_tiles,),
        in_specs=[
            # x: streamed per grid step, auto double-buffered by BlockSpec.
            pl.BlockSpec((tb, 28 * 28), lambda i: (i, 0)),
            # weights/biases: constant index_map -> resident in VMEM.
            pl.BlockSpec((28 * 28, 10), lambda i: (0, 0)),
            pl.BlockSpec((1, 10), lambda i: (0, 0)),
            pl.BlockSpec((1, 10), lambda i: (0, 0)),
            pl.BlockSpec((1, 1), lambda i: (0, 0)),
        ],
        # Lane-dense output: one (1, tb) row per grid step.
        out_specs=pl.BlockSpec((1, tb), lambda i: (i, 0)),
        compiler_params=pltpu.CompilerParams(
            # Batch tiles are independent -> shard the grid across TCs where
            # the part has more than one (v7x).
            dimension_semantics=("parallel",),
            vmem_limit_bytes=vmem_limit,
        ),
    )(x_flat, w0, b0_row, w1_row, b1_2d)

    # (num_tiles, tb) -> (num_tiles*tb, 1); drop the garbage rows of the
    # (possibly) partial last tile.  Keep this slice: the boundary block reads
    # out-of-bounds rows, which is only correct because they are discarded.
    return out_rows.reshape(num_tiles * tb, 1)[:B]


def init_params(key):
    """Deterministic init mimicking nn.Linear's U(-1/sqrt(fan_in), 1/sqrt(fan_in))."""
    k0, k1, k2, k3 = jax.random.split(key, 4)
    lim0 = 1.0 / jnp.sqrt(784.0)
    lim1 = 1.0 / jnp.sqrt(10.0)
    # stored as (in_features, out_features)
    w0 = jax.random.uniform(k0, (784, 10), jnp.float32, -lim0, lim0)
    b0 = jax.random.uniform(k1, (10,), jnp.float32, -lim0, lim0)
    w1 = jax.random.uniform(k2, (10, 1), jnp.float32, -lim1, lim1)
    b1 = jax.random.uniform(k3, (1,), jnp.float32, -lim1, lim1)
    return w0, b0, w1, b1


def _reference(x, w0, b0, w1, b1):
    """Pure-JAX reference, same math as the PyTorch module (f32 throughout)."""
    x_flat = x.reshape(x.shape[0], -1).astype(jnp.float32)
    return jax.nn.sigmoid(jnp.maximum(x_flat @ w0 + b0, 0.0) @ w1 + b1)


if __name__ == "__main__":
    key = jax.random.PRNGKey(0)
    k_x, k_x2, k_p = jax.random.split(key, 3)

    w0, b0, w1, b1 = init_params(k_p)

    # Small case (B=2), the module's expected NCHW input (B, 1, 28, 28).
    B = 2
    x = jax.random.normal(k_x, (B, 1, 28, 28), dtype=jnp.float32)
    out = jax.block_until_ready(netd_forward(x, w0, b0, w1, b1))
    ref = _reference(x, w0, b0, w1, b1)
    assert out.shape == (B, 1)
    assert jnp.allclose(out, ref, atol=2e-3, rtol=2e-3), (out, ref)

    # Larger ragged batch: exercises the cdiv grid, multi-tile pipelining and
    # the masked partial boundary block (no whole-array pad).
    B2 = 1000
    x2 = jax.random.normal(k_x2, (B2, 1, 28, 28), dtype=jnp.float32)
    out2 = jax.block_until_ready(netd_forward(x2, w0, b0, w1, b1, block_b=512))
    ref2 = _reference(x2, w0, b0, w1, b1)
    assert out2.shape == (B2, 1)
    assert jnp.allclose(out2, ref2, atol=2e-3, rtol=2e-3)

    # Caller-provided bf16 x (simulating x stored as bf16 end-to-end in HBM);
    # no cast happens inside netd_forward.
    x2_bf16 = x2.astype(jnp.bfloat16)
    out2_bf16 = jax.block_until_ready(
        netd_forward(x2_bf16, w0, b0, w1, b1, block_b=512))
    assert out2_bf16.shape == (B2, 1)
    assert bool(jnp.all(jnp.isfinite(out2_bf16)))
    assert jnp.allclose(out2_bf16, ref2, atol=3e-2, rtol=3e-2)

    print("KERNEL_OK")
</pallas_src>

<mosaic_0001>
module attributes {stable_mosaic.version = 11 : i64} {
  func.func @netd_kernel(%arg0: i32, %arg1: memref<2x784xf32, #tpu.memory_space<vmem>>, %arg2: memref<784x10xf32, #tpu.memory_space<vmem>>, %arg3: memref<1x10xf32, #tpu.memory_space<vmem>>, %arg4: memref<1x10xf32, #tpu.memory_space<vmem>>, %arg5: memref<1x1xf32, #tpu.memory_space<vmem>>, %arg6: memref<1x2xf32, #tpu.memory_space<vmem>>) attributes {dimension_semantics = [#tpu.dimension_semantics<parallel>], iteration_bounds = array<i64: 1>, scalar_prefetch = 0 : i64, scratch_operands = 0 : i64, tpu.core_type = #tpu.core_type<tc>, window_params = [{transform_indices = @transform_0, window_bounds = array<i64: 2, 784>}, {pipeline_mode = #tpu.pipeline_mode<synchronous>, transform_indices = @transform_1, window_bounds = array<i64: 784, 10>}, {pipeline_mode = #tpu.pipeline_mode<synchronous>, transform_indices = @transform_2, window_bounds = array<i64: 1, 10>}, {pipeline_mode = #tpu.pipeline_mode<synchronous>, transform_indices = @transform_3, window_bounds = array<i64: 1, 10>}, {pipeline_mode = #tpu.pipeline_mode<synchronous>, transform_indices = @transform_4, window_bounds = array<i64: 1, 1>}, {transform_indices = @transform_5, window_bounds = array<i64: 1, 2>}]} {
    %c0 = arith.constant 0 : index
    %c0_0 = arith.constant 0 : index
    %0 = vector.load %arg1[%c0, %c0_0] : memref<2x784xf32, #tpu.memory_space<vmem>>, vector<2x784xf32>
    %c0_1 = arith.constant 0 : index
    %c0_2 = arith.constant 0 : index
    %1 = vector.load %arg2[%c0_1, %c0_2] : memref<784x10xf32, #tpu.memory_space<vmem>>, vector<784x10xf32>
    %cst = arith.constant dense<0.000000e+00> : vector<2x10xf32>
    %2 = tpu.matmul %0, %1, %cst {dimension_numbers = #tpu.dot_dimension_numbers<[1], [0], [0], [1], [0, 0, 1, 1], [], []>} : vector<2x784xf32>, vector<784x10xf32>, vector<2x10xf32> -> vector<2x10xf32>
    %c0_3 = arith.constant 0 : index
    %c0_4 = arith.constant 0 : index
    %3 = vector.load %arg3[%c0_3, %c0_4] : memref<1x10xf32, #tpu.memory_space<vmem>>, vector<1x10xf32>
    %4 = vector.broadcast %3 : vector<1x10xf32> to vector<2x10xf32>
    %5 = arith.addf %2, %4 : vector<2x10xf32>
    %cst_5 = arith.constant 0.000000e+00 : f32
    %6 = vector.broadcast %cst_5 : f32 to vector<2x10xf32>
    %7 = arith.maximumf %5, %6 : vector<2x10xf32>
    %c0_6 = arith.constant 0 : index
    %c0_7 = arith.constant 0 : index
    %8 = vector.load %arg4[%c0_6, %c0_7] : memref<1x10xf32, #tpu.memory_space<vmem>>, vector<1x10xf32>
    %cst_8 = arith.constant dense<0.000000e+00> : vector<1x2xf32>
    %9 = tpu.matmul %8, %7, %cst_8 {dimension_numbers = #tpu.dot_dimension_numbers<[1], [1], [0], [0], [0, 0, 1, 0], [], []>} : vector<1x10xf32>, vector<2x10xf32>, vector<1x2xf32> -> vector<1x2xf32>
    %c0_9 = arith.constant 0 : index
    %c0_10 = arith.constant 0 : index
    %10 = vector.load %arg5[%c0_9, %c0_10] : memref<1x1xf32, #tpu.memory_space<vmem>>, vector<1x1xf32>
    %11 = vector.broadcast %10 : vector<1x1xf32> to vector<1x2xf32>
    %12 = arith.addf %9, %11 : vector<1x2xf32>
    %cst_11 = arith.constant 0.000000e+00 : f32
    %13 = vector.broadcast %cst_11 : f32 to vector<1x2xf32>
    %14 = arith.subf %13, %12 : vector<1x2xf32>
    %15 = math.exp %14 : vector<1x2xf32>
    %cst_12 = arith.constant 1.000000e+00 : f32
    %16 = vector.broadcast %cst_12 : f32 to vector<1x2xf32>
    %17 = arith.addf %16, %15 : vector<1x2xf32>
    %cst_13 = arith.constant 1.000000e+00 : f32
    %18 = vector.broadcast %cst_13 : f32 to vector<1x2xf32>
    %19 = arith.divf %18, %17 : vector<1x2xf32>
    %c0_14 = arith.constant 0 : index
    %c0_15 = arith.constant 0 : index
    %20 = vector.load %arg6[%c0_14, %c0_15] : memref<1x2xf32, #tpu.memory_space<vmem>>, vector<1x2xf32>
    tpu.vector_store %arg6[%c0_14, %c0_15], %19 {strides = array<i32>} : memref<1x2xf32, #tpu.memory_space<vmem>>, vector<1x2xf32>,
    return
  }
  func.func @transform_0(%arg0: i32) -> (i32, i32) {
    %c0_i32 = arith.constant 0 : i32
    %c0_i32_0 = arith.constant 0 : i32
    return %arg0, %c0_i32 : i32, i32
  }
  func.func @transform_1(%arg0: i32) -> (i32, i32) {
    %c0_i32 = arith.constant 0 : i32
    %c0_i32_0 = arith.constant 0 : i32
    %c0_i32_1 = arith.constant 0 : i32
    return %c0_i32, %c0_i32_0 : i32, i32
  }
  func.func @transform_2(%arg0: i32) -> (i32, i32) {
    %c0_i32 = arith.constant 0 : i32
    %c0_i32_0 = arith.constant 0 : i32
    %c0_i32_1 = arith.constant 0 : i32
    return %c0_i32, %c0_i32_0 : i32, i32
  }
  func.func @transform_3(%arg0: i32) -> (i32, i32) {
    %c0_i32 = arith.constant 0 : i32
    %c0_i32_0 = arith.constant 0 : i32
    %c0_i32_1 = arith.constant 0 : i32
    return %c0_i32, %c0_i32_0 : i32, i32
  }
  func.func @transform_4(%arg0: i32) -> (i32, i32) {
    %c0_i32 = arith.constant 0 : i32
    %c0_i32_0 = arith.constant 0 : i32
    %c0_i32_1 = arith.constant 0 : i32
    return %c0_i32, %c0_i32_0 : i32, i32
  }
  func.func @transform_5(%arg0: i32) -> (i32, i32) {
    %c0_i32 = arith.constant 0 : i32
    %c0_i32_0 = arith.constant 0 : i32
    return %arg0, %c0_i32 : i32, i32
  }
}

</mosaic_0001>

<bundles_post_ra>
// kernel: netd_forward.1
= control target key start
LH: loop header
LB: loop body
LE: loop exit
PB: predicated region body
PF: predicated region fallthrough
CT: control target
= control target key end

     0   :  { %s1087_s0 = inlined_call_operand.vmem [shape: f32[2,784], index: 0, kind: input, shape index: {}]   ;;  %s1088_s1 = inlined_call_operand.vmem [shape: f32[784,10], index: 1, kind: input, shape index: {}]   ;;  %s1089_s2 = inlined_call_operand.vmem [shape: f32[1,10], index: 2, kind: input, shape index: {}]   ;;  %s1090_s3 = inlined_call_operand.vmem [shape: f32[1,10], index: 3, kind: input, shape index: {}]   ;;  %s1091_s4 = inlined_call_operand.<no memory space> [shape: f32[1,1], index: 4, kind: input, shape index: {}]   ;;  %s1092_s5 = inlined_call_operand.hbm [shape: f32[1,2], index: 5, kind: output, shape index: {}]  }
   0x1   :  { %v10_v0 = vstv %s1091_s4 }
   0x2   :  { %11 = vst [vmem:[#allocation2] sm:$0x1] %v10_v0 }
   0x3   :  { %v56_v1 = vld [vmem:[%s1088_s1 + $0xf8] sm:$0xff]  ;;  %v55_v3 = vld [vmem:[%s1088_s1 + $0xf0] sm:$0xff]  ;;  %v54_v7 = vld [vmem:[%s1088_s1 + $0xe8] sm:$0xff]  ;;  %v725_v28 = vmov 1983009808   ;;  %v136_v30 = vlaneseq }
   0x4   :  { %v40_v2 = vld [vmem:[%s1088_s1 + $0x78] sm:$0xff]  ;;  %569 = vmatprep.subr.mxu0 %v56_v1  ;;  %v39_v5 = vld [vmem:[%s1088_s1 + $0x70] sm:$0xff]  ;;  %v38_v9 = vld [vmem:[%s1088_s1 + $0x68] sm:$0xff]  ;;  %v134_v29 = vunpack.c.l.s4 %v725_v28 }
   0x5   :  { %v88_v4 = vld [vmem:[%s1088_s1 + $0x1f8] sm:$0xff]  ;;  %570 = vmatpush3.msra.mxu0 %v40_v2  ;;  %v87_v8 = vld [vmem:[%s1088_s1 + $0x1f0] sm:$0xff]  ;;  %v86_v11 = vld [vmem:[%s1088_s1 + $0x1e8] sm:$0xff]  ;;  %v868_v40 = vshrl.u32 %v136_v30, 7 }
   0x6   :  { %v72_v6 = vld [vmem:[%s1088_s1 + $0x178] sm:$0xff]  ;;  %604 = vmatprep.subr.mxu1 %v88_v4  ;;  %571 = vmatprep.subr.mxu0 %v55_v3  ;;  %v71_v10 = vld [vmem:[%s1088_s1 + $0x170] sm:$0xff]  ;;  %v53_v12 = vld [vmem:[%s1088_s1 + $0xe0] sm:$0xff]  ;;  %v135_v39 = vunpack.c.0.s8 %v134_v29 }
   0x7   :  { %605 = vmatpush3.msra.mxu1 %v72_v6  ;;  %572 = vmatpush3.msra.mxu0 %v39_v5  ;;  %v70_v13 = vld [vmem:[%s1088_s1 + $0x168] sm:$0xff]  ;;  %v37_v14 = vld [vmem:[%s1088_s1 + $0x60] sm:$0xff]  ;;  %v52_v16 = vld [vmem:[%s1088_s1 + $0xd8] sm:$0xff] }
   0x8   :  { %606 = vmatprep.subr.mxu1 %v87_v8  ;;  %573 = vmatprep.subr.mxu0 %v54_v7  ;;  %v85_v15 = vld [vmem:[%s1088_s1 + $0x1e0] sm:$0xff]  ;;  %v36_v18 = vld [vmem:[%s1088_s1 + $0x58] sm:$0xff]  ;;  %v51_v20 = vld [vmem:[%s1088_s1 + $0xd0] sm:$0xff]  ;;  %v895_v49 = vsub.s32 %v135_v39, %v868_v40 }
   0x9   :  { %607 = vmatpush3.msra.mxu1 %v71_v10  ;;  %574 = vmatpush3.msra.mxu0 %v38_v9  ;;  %v69_v17 = vld [vmem:[%s1088_s1 + $0x160] sm:$0xff]  ;;  %v84_v19 = vld [vmem:[%s1088_s1 + $0x1d8] sm:$0xff]  ;;  %v35_v22 = vld [vmem:[%s1088_s1 + $0x50] sm:$0xff] }
   0xa   :  { %608 = vmatprep.subr.mxu1 %v86_v11  ;;  %575 = vmatprep.subr.mxu0 %v53_v12  ;;  %v68_v21 = vld [vmem:[%s1088_s1 + $0x158] sm:$0xff]  ;;  %v83_v23 = vld [vmem:[%s1088_s1 + $0x1d0] sm:$0xff]  ;;  %v50_v24 = vld [vmem:[%s1088_s1 + $0xc8] sm:$0xff] }
   0xb   :  { %609 = vmatpush3.msra.mxu1 %v70_v13  ;;  %576 = vmatpush3.msra.mxu0 %v37_v14  ;;  %v67_v25 = vld [vmem:[%s1088_s1 + $0x150] sm:$0xff]  ;;  %v34_v26 = vld [vmem:[%s1088_s1 + $0x48] sm:$0xff]  ;;  %v49_v31 = vld [vmem:[%s1088_s1 + $0xc0] sm:$0xff] }
   0xc   :  { %610 = vmatprep.subr.mxu1 %v85_v15  ;;  %577 = vmatprep.subr.mxu0 %v52_v16  ;;  %v82_v27 = vld [vmem:[%s1088_s1 + $0x1c8] sm:$0xff]  ;;  %v33_v33 = vld [vmem:[%s1088_s1 + $0x40] sm:$0xff]  ;;  %v48_v35 = vld [vmem:[%s1088_s1 + $0xb8] sm:$0xff] }
   0xd   :  { %611 = vmatpush3.msra.mxu1 %v69_v17  ;;  %578 = vmatpush3.msra.mxu0 %v36_v18  ;;  %v66_v32 = vld [vmem:[%s1088_s1 + $0x148] sm:$0xff]  ;;  %v81_v34 = vld [vmem:[%s1088_s1 + $0x1c0] sm:$0xff]  ;;  %v32_v37 = vld [vmem:[%s1088_s1 + $0x38] sm:$0xff] }
   0xe   :  { %612 = vmatprep.subr.mxu1 %v84_v19  ;;  %579 = vmatprep.subr.mxu0 %v51_v20  ;;  %v65_v36 = vld [vmem:[%s1088_s1 + $0x140] sm:$0xff]  ;;  %v80_v38 = vld [vmem:[%s1088_s1 + $0x1b8] sm:$0xff]  ;;  %v47_v41 = vld [vmem:[%s1088_s1 + $0xb0] sm:$0xff] }
   0xf   :  { %613 = vmatpush3.msra.mxu1 %v68_v21  ;;  %580 = vmatpush3.msra.mxu0 %v35_v22  ;;  %v64_v42 = vld [vmem:[%s1088_s1 + $0x138] sm:$0xff]  ;;  %v31_v43 = vld [vmem:[%s1088_s1 + $0x30] sm:$0xff]  ;;  %v46_v45 = vld [vmem:[%s1088_s1 + $0xa8] sm:$0xff] }
  0x10   :  { %614 = vmatprep.subr.mxu1 %v83_v23  ;;  %581 = vmatprep.subr.mxu0 %v50_v24  ;;  %v79_v44 = vld [vmem:[%s1088_s1 + $0x1b0] sm:$0xff]  ;;  %v30_v47 = vld [vmem:[%s1088_s1 + $0x28] sm:$0xff]  ;;  %v45_v50 = vld [vmem:[%s1088_s1 + $0xa0] sm:$0xff] }
  0x11   :  { %615 = vmatpush3.msra.mxu1 %v67_v25  ;;  %582 = vmatpush3.msra.mxu0 %v34_v26  ;;  %v63_v46 = vld [vmem:[%s1088_s1 + $0x130] sm:$0xff]  ;;  %v78_v48 = vld [vmem:[%s1088_s1 + $0x1a8] sm:$0xff]  ;;  %v23_v52 = vld [vmem:[%s1087_s0] sm:$0xff] }
  0x12   :  { %616 = vmatprep.subr.mxu1 %v82_v27  ;;  %583 = vmatprep.subr.mxu0 %v49_v31  ;;  %v62_v51 = vld [vmem:[%s1088_s1 + $0x128] sm:$0xff]  ;;  %v29_v53 = vld [vmem:[%s1088_s1 + $0x20] sm:$0xff]  ;;  %v44_v55 = vld [vmem:[%s1088_s1 + $0x98] sm:$0xff]  ;;  %v139_v59 = vrot.slane %v23_v52, %v895_v49  ;;  %v132_v60 = vcombine.high %v23_v52, %v23_v52 }
  0x13   :  { %617 = vmatpush3.msra.mxu1 %v66_v32  ;;  %584 = vmatpush3.msra.mxu0 %v33_v33  ;;  %v77_v54 = vld [vmem:[%s1088_s1 + $0x1a0] sm:$0xff]  ;;  %v28_v57 = vld [vmem:[%s1088_s1 + $0x18] sm:$0xff]  ;;  %v43_v61 = vld [vmem:[%s1088_s1 + $0x90] sm:$0xff] }
  0x14   :  { %618 = vmatprep.subr.mxu1 %v81_v34  ;;  %585 = vmatprep.subr.mxu0 %v48_v35  ;;  %v61_v56 = vld [vmem:[%s1088_s1 + $0x120] sm:$0xff]  ;;  %v76_v58 = vld [vmem:[%s1088_s1 + $0x198] sm:$0xff]  ;;  %v27_v63 = vld [vmem:[%s1088_s1 + $0x10] sm:$0xff]  ;;  %v147_v5 = vcombine.high %v139_v59, %v139_v59  ;;  %v146_v6 = vrot.slane %v132_v60, %v895_v49 }
  0x15   :  { %619 = vmatpush3.msra.mxu1 %v65_v36  ;;  %586 = vmatpush3.msra.mxu0 %v32_v37  ;;  %v60_v62 = vld [vmem:[%s1088_s1 + $0x118] sm:$0xff]  ;;  %v75_v0 = vld [vmem:[%s1088_s1 + $0x190] sm:$0xff]  ;;  %v42_v1 = vld [vmem:[%s1088_s1 + $0x88] sm:$0xff] }
  0x16   :  { %620 = vmatprep.subr.mxu1 %v80_v38  ;;  %587 = vmatprep.subr.mxu0 %v47_v41  ;;  %v59_v2 = vld [vmem:[%s1088_s1 + $0x110] sm:$0xff]  ;;  %v26_v3 = vld [vmem:[%s1088_s1 + $0x8] sm:$0xff]  ;;  %v41_v7 = vld [vmem:[%s1088_s1 + $0x80] sm:$0xff]  ;;  %v148_v13 = vcombine.high %v146_v6, %v146_v6 }
  0x17   :  { %621 = vmatpush3.msra.mxu1 %v64_v42  ;;  %588 = vmatpush3.msra.mxu0 %v31_v43  ;;  %v74_v4 = vld [vmem:[%s1088_s1 + $0x188] sm:$0xff]  ;;  %v25_v8 = vld [vmem:[%s1088_s1] sm:$0xff]  ;;  %v120_v11 = vld [vmem:[%s1088_s1 + $0x2f8] sm:$0xff] }
  0x18   :  { %622 = vmatprep.subr.mxu1 %v79_v44  ;;  %589 = vmatprep.subr.mxu0 %v46_v45  ;;  %v58_v9 = vld [vmem:[%s1088_s1 + $0x108] sm:$0xff]  ;;  %v73_v10 = vld [vmem:[%s1088_s1 + $0x180] sm:$0xff]  ;;  %v104_v14 = vld [vmem:[%s1088_s1 + $0x278] sm:$0xff] }
  0x19   :  { %623 = vmatpush3.msra.mxu1 %v63_v46  ;;  %590 = vmatpush3.msra.mxu0 %v30_v47  ;;  %v57_v12 = vld [vmem:[%s1088_s1 + $0x100] sm:$0xff]  ;;  %v24_v15 = vld [vmem:[%s1087_s0 + $0x8] sm:$0x3f]  ;;  %v119_v16 = vld [vmem:[%s1088_s1 + $0x2f0] sm:$0xff] }
  0x1a   :  { %624 = vmatprep.subr.mxu1 %v78_v48  ;;  %591 = vmatprep.subr.mxu0 %v45_v50  ;;  %v978_v17 = vrot.slane %v24_v15, %v895_v49 }
  0x1b   :  { %625 = vmatpush3.msra.mxu1 %v62_v51  ;;  %592 = vmatpush3.msra.mxu0 %v29_v53 }
  0x1c   :  { %626 = vmatprep.subr.mxu1 %v77_v54  ;;  %593 = vmatprep.subr.mxu0 %v44_v55 }
  0x1d   :  { %627 = vmatpush3.msra.mxu1 %v61_v56  ;;  %594 = vmatpush3.msra.mxu0 %v28_v57 }
  0x1e   :  { %628 = vmatprep.subr.mxu1 %v76_v58  ;;  %595 = vmatprep.subr.mxu0 %v43_v61 }
  0x1f   :  { %629 = vmatpush3.msra.mxu1 %v60_v62  ;;  %596 = vmatpush3.msra.mxu0 %v27_v63 }
  0x20   :  { %630 = vmatprep.subr.mxu1 %v75_v0  ;;  %597 = vmatprep.subr.mxu0 %v42_v1 }
  0x21   :  { %631 = vmatpush3.msra.mxu1 %v59_v2  ;;  %598 = vmatpush3.msra.mxu0 %v26_v3 }
  0x22   :  { %632 = vmatprep.subr.mxu1 %v74_v4  ;;  %599 = vmatprep.subr.mxu0 %v41_v7 }
  0x23   :  { %238 = vmatprep.mubr.f32.mxu0 %v147_v5  ;;  %600 = vmatpush3.msra.mxu0 %v25_v8 }
  0x24   :  { %633 = vmatpush3.msra.mxu1 %v58_v9  ;;  %239 = vmatmul.mubr.f32.vlgmr.msra.gmra.mxu0 %v139_v59 }
  0x25   :  { %634 = vmatprep.subr.mxu1 %v73_v10 }
  0x26   :  { %12 = vsyncpa [#allocation4], 0  ;;  %639 = vmatprep.subr.mxu0 %v120_v11  ;;  %635 = vmatpush3.msra.mxu1 %v57_v12  ;;  %v103_v18 = vld [vmem:[%s1088_s1 + $0x270] sm:$0xff]  ;;  %v118_v19 = vld [vmem:[%s1088_s1 + $0x2e8] sm:$0xff]  ;;  %v149_v20 = vcombine.high %v24_v15, %v24_v15  ;;  %v164_v21 = vcombine.high %v978_v17, %v978_v17  ;;  %v726_v26 = vmov 0.0   ;;  %vm171_vm0 = vcmask 130048  }
  0x27   :  { %308 = vmatprep.mubr.f32.mxu1 %v148_v13  ;;  %640 = vmatpush3.msra.mxu0 %v104_v14  ;;  %v102_v22 = vld [vmem:[%s1088_s1 + $0x268] sm:$0xff]  ;;  %v117_v24 = vld [vmem:[%s1088_s1 + $0x2e0] sm:$0xff]  ;;  %v116_v28 = vld [vmem:[%s1088_s1 + $0x2d8] sm:$0xff]  ;;  %vm727_vm1 = vmmov 0   ;;  %v728_v55 = vmov 0   ;;  %vm466_vm2 = vcmask 80896  }
  0x28   :  { %309 = vmatmul.mubr.f32.vlgmr.msra.gmra.mxu1 %v146_v6  ;;  %641 = vmatprep.subr.mxu0 %v119_v16  ;;  %v122_v23 = vld [vmem:[%s1088_s1 + $0x308] sm:$0xff]  ;;  %v101_v25 = vld [vmem:[%s1088_s1 + $0x260] sm:$0xff]  ;;  %v163_v29 = vrot.slane %v149_v20, %v895_v49  ;;  %v100_v30 = vld [vmem:[%s1088_s1 + $0x258] sm:$0xff]  ;;  %v464_v10 = vsub.s32 0, %v868_v40  ;;  %vm549_vm3 = vcmask 8192  }
  0x29   :  { %642 = vmatpush3.msra.mxu0 %v103_v18  ;;  %378 = vmatprep.mubr.f32.mxu0 %v164_v21  ;;  %v121_v27 = vld [vmem:[%s1088_s1 + $0x300] sm:$0xff]  ;;  %v115_v31 = vld [vmem:[%s1088_s1 + $0x2d0] sm:$0xff]  ;;  %v114_v33 = vld [vmem:[%s1088_s1 + $0x2c8] sm:$0xff] }
  0x2a   :  { %643 = vmatprep.subr.mxu0 %v118_v19  ;;  %679 = vmatprep.subr.mxu1 %v726_v26  ;;  %v99_v32 = vld [vmem:[%s1088_s1 + $0x250] sm:$0xff]  ;;  %v98_v34 = vld [vmem:[%s1088_s1 + $0x248] sm:$0xff]  ;;  %v113_v35 = vld [vmem:[%s1088_s1 + $0x2c0] sm:$0xff] }
  0x2b   :  { %644 = vmatpush3.msra.mxu0 %v102_v22  ;;  %680 = vmatpush3.msra.mxu1 %v122_v23  ;;  %v97_v36 = vld [vmem:[%s1088_s1 + $0x240] sm:$0xff]  ;;  %v112_v37 = vld [vmem:[%s1088_s1 + $0x2b8] sm:$0xff]  ;;  %v111_v39 = vld [vmem:[%s1088_s1 + $0x2b0] sm:$0xff] }
  0x2c   :  { %645 = vmatprep.subr.mxu0 %v117_v24  ;;  %681 = vmatprep.subr.mxu1 %v726_v26  ;;  %v96_v38 = vld [vmem:[%s1088_s1 + $0x238] sm:$0xff]  ;;  %v95_v41 = vld [vmem:[%s1088_s1 + $0x230] sm:$0xff]  ;;  %v110_v42 = vld [vmem:[%s1088_s1 + $0x2a8] sm:$0xff] }
  0x2d   :  { %646 = vmatpush3.msra.mxu0 %v101_v25  ;;  %682 = vmatpush3.msra.mxu1 %v121_v27  ;;  %v94_v43 = vld [vmem:[%s1088_s1 + $0x228] sm:$0xff]  ;;  %v109_v44 = vld [vmem:[%s1088_s1 + $0x2a0] sm:$0xff]  ;;  %v108_v46 = vld [vmem:[%s1088_s1 + $0x298] sm:$0xff] }
  0x2e   :  { %647 = vmatprep.subr.mxu0 %v116_v28  ;;  %683 = vmatprep.mubr.msk.f32.mxu1 %vm727_vm1, %v726_v26  ;;  %v93_v45 = vld [vmem:[%s1088_s1 + $0x220] sm:$0xff]  ;;  %v92_v47 = vld [vmem:[%s1088_s1 + $0x218] sm:$0xff]  ;;  %v107_v48 = vld [vmem:[%s1088_s1 + $0x290] sm:$0xff] }
  0x2f   :  { %648 = vmatpush3.msra.mxu0 %v100_v30  ;;  %684 = vmatmul.mubr.msk.f32.vlgmr.msra.gmra.mxu1 %vm171_vm0, %v163_v29  ;;  %v91_v49 = vld [vmem:[%s1088_s1 + $0x210] sm:$0xff]  ;;  %v106_v50 = vld [vmem:[%s1088_s1 + $0x288] sm:$0xff]  ;;  %v105_v52 = vld [vmem:[%s1088_s1 + $0x280] sm:$0xff] }
  0x30   :  { %649 = vmatprep.subr.mxu0 %v115_v31  ;;  %686 = vmatprep.subr.mxu1 %v726_v26  ;;  %v90_v51 = vld [vmem:[%s1088_s1 + $0x208] sm:$0xff]  ;;  %v89_v53 = vld [vmem:[%s1088_s1 + $0x200] sm:$0xff] }
  0x31   :  { %650 = vmatpush3.msra.mxu0 %v99_v32  ;;  %688 = vmatprep.mubr.msk.f32.mxu1 %vm727_vm1, %v726_v26  ;;  %v456_v54 = vld [vmem:[#allocation2] sm:$0x1] }
  0x32   :  { %651 = vmatprep.subr.mxu0 %v114_v33  ;;  %696 = vset.pattern.permute.xlu0 %v728_v55  ;;  %v565_v63 = vld [vmem:[%s1089_s2] ss:$0 sm:$0xff]  ;;  %s729_s2 = smov [#allocation3]  }
  0x33   :  { %652 = vmatpush3.msra.mxu0 %v98_v34  ;;  %459 = vperm.xlu0 %696, %v456_v54   ;;  %v455_v9 = vld [vmem:[%s1090_s3] sm:$0x1]  ;;  %s557_s12 = sshll.u32 %s729_s2, 4  ;;  %s558_s12 = int_to_ptr.vmem [resolvable:$true] %s557_s12 }
  0x34   :  { %653 = vmatprep.subr.mxu0 %v113_v35  ;;  %s703_s3 = scalar_lea.vmem %s558_s12, 16  ;;  %s707_s13 = scalar_lea.vmem %s558_s12, 32 }
  0x35   :  { %654 = vmatpush3.msra.mxu0 %v97_v36  ;;  %p704_p0 = scmp.ne.s32.totalorder %s558_s12, %s703_s3  ;;  %p708_p1 = scmp.lt.s32.totalorder %s558_s12, %s558_s12 }
  0x36   :  { %655 = vmatprep.subr.mxu0 %v112_v37  ;;  %p709_p2 = scmp.lt.s32.totalorder %s707_s13, %s703_s3 }
  0x37   :  { %656 = vmatpush3.msra.mxu0 %v96_v38 }
  0x38   :  { %657 = vmatprep.subr.mxu0 %v111_v39  ;;  %p710_p3 = por %p709_p2, %p708_p1 }
  0x39   :  { %658 = vmatpush3.msra.mxu0 %v95_v41 }
  0x3a   :  { %659 = vmatprep.subr.mxu0 %v110_v42  ;;  %p711_p4 = pnand %p710_p3, %p704_p0 }
  0x3b   :  { %660 = vmatpush3.msra.mxu0 %v94_v43 }
  0x3c   :  { %661 = vmatprep.subr.mxu0 %v109_v44 }
  0x3d   :  { %662 = vmatpush3.msra.mxu0 %v93_v45 }
  0x3e   :  { %663 = vmatprep.subr.mxu0 %v108_v46 }
  0x3f   :  { %664 = vmatpush3.msra.mxu0 %v92_v47 }
  0x40   :  { %665 = vmatprep.subr.mxu0 %v107_v48 }
  0x41   :  { %666 = vmatpush3.msra.mxu0 %v91_v49 }
  0x42   :  { %667 = vmatprep.subr.mxu0 %v106_v50 }
  0x43   :  { %668 = vmatpush3.msra.mxu0 %v90_v51 }
  0x44   :  { %669 = vmatprep.subr.mxu0 %v105_v52 }
  0x45   :  { %670 = vmatpush3.msra.mxu0 %v89_v53 }
  0x46   :  { %379 = vmatmul.mubr.f32.vlgmr.msra.gmra.mxu0 %v978_v17 }
  0xae   :  { %v460_v11 = vpop.permute.xlu0 %459 }
  0xaf   :  { %v465_v12 = vrot.slane %v460_v11, %v464_v10 }
  0xe4   :  { %v601_v60 = vpop.f32.mrf.mxu0 }
  0xe6   :  { %v602_v61 = vpop.f32.mrf.mxu0 }
  0xe7   :  { %v603_v62 = vadd.f32 %v602_v61, %v601_v60 }
  0xe8   :  { %v636_v56 = vpop.f32.mrf.mxu1 }
  0xe9   :  { %v241_v0 = vadd.f32 %v603_v62, %v565_v63 }
  0xea   :  { %v637_v57 = vpop.f32.mrf.mxu1 }
  0xeb   :  { %v638_v1 = vadd.f32 %v637_v57, %v636_v56 }
  0xed   :  { %v311_v4 = vadd.f32 %v638_v1, %v241_v0 }
  0xef   :  { %v450_v58 = vpop.f32.mrf.mxu1 }
  0xf1   :  { %v685_v59 = vpop.f32.mrf.mxu1 }
 0x106   :  { %v671_v2 = vpop.f32.mrf.mxu0 }
 0x108   :  { %v672_v3 = vpop.f32.mrf.mxu0 }
 0x109   :  { %v673_v5 = vadd.f32 %v672_v3, %v671_v2 }
 0x10b   :  { %v381_v6 = vadd.f32 %v673_v5, %v311_v4 }
 0x10d   :  { %v451_v7 = vadd.f32 %v450_v58, %v381_v6 }
 0x10f   :  { %v454_v8 = vmax.f32 %v451_v7, 0.0 }
 0x111   :  { %687 = vmatpush3.xpose.msk.msra.mxu1 %vm466_vm2, %v454_v8 }
 0x114   :  { %689 = vmatmul.mubr.msk.f32.vlgmr.msra.gmra.mxu1 %vm466_vm2, %v455_v9 }
 0x1d4   :  { %v539_v13 = vpop.f32.mrf.mxu1 }
 0x1d5   :  { %v540_v14 = vadd.f32 %v539_v13, %v465_v12 }
 0x1d6   :  { %v690_v15 = vpop.f32.mrf.mxu1 }
 0x1d7   :  { %v543_v16 = vsub.f32 0.0, %v540_v14 }
 0x1d9   :  { %v544_v17 = vmul.f32 1.442695, %v543_v16 }
 0x1db   :  { %699 = vpow2.f32 %v544_v17 }
 0x1e8   :  { %v700_v18 = vpop.eup %699 }
 0x1e9   :  { %v546_v19 = vadd.f32 1.0, %v700_v18 }
 0x1eb   :  { %701 = vrcp.f32 %v546_v19 }
 0x1f8   :  { %v702_v20 = vpop.eup %701 }
 0x1f9   :  { %550 = vst.msk [vmem:[#allocation3] sm:$0x1] %vm549_vm3, %v702_v20 }
 0x1fa   :  { %714 = shalt.err (!%p711_p4)
}
 0x1fb   :  { %560 = dma.vmem_to_hbm [thread:$0]  %s558_s12, 16, %s1092_s5, [#allocation4]  }
 0x1fc   :  { %723 = dma.done.wait [#allocation4], 16  }
 0x1fd   :  { %724 = vsyncadd [#allocation4], 4294967280 }
 0x1fe   :  { %564 = vsyncpa [#allocation4], 1 }

</bundles_post_ra>
